<compile_context>
chip_gen: v7x
topology: tpu7x:2x2x1
jax: 0.10.0
libtpu: 0.0.40
codegen_flags: <defaults>
</compile_context>

<pallas_src>
import functools

import jax
import jax.numpy as jnp
from jax.experimental import pallas as pl
from jax.experimental.pallas import tpu as pltpu


def _mlp_kernel(x_ref, w1_ref, b1_ref, w2_ref, b2_ref, w3_ref, b3_ref, o_ref):
    """Fused MLP forward: Linear->ReLU, Linear(+BN1)->ReLU, head(+BN2)."""
    # Layer 1: Linear -> ReLU.  (BN1 is folded into layer-2 weights/bias.)
    h1 = jnp.dot(x_ref[...], w1_ref[...], preferred_element_type=jnp.float32)
    h1 = jnp.maximum(h1 + b1_ref[...], 0.0)                      # (TB, H1) f32

    # Layer 2: Linear (with BN1 folded in) -> ReLU.  (BN2 folded into head.)
    h2 = jnp.dot(h1.astype(w2_ref.dtype), w2_ref[...],
                 preferred_element_type=jnp.float32)
    h2 = jnp.maximum(h2 + b2_ref[...], 0.0)                      # (TB, H2) f32

    # Head: Linear(H2 -> 1) with BN2 folded in.  Computed as
    #   w3_row (8, H2) . h2 (TB, H2)^T  ->  (8, TB)
    # ("NT" contraction over the feature axis) so the useful result is a
    # lane-dense (1, TB) row; only row 0 of w3 is real (rows 1..7 are zero
    # padding for sublane alignment).
    head = jax.lax.dot_general(
        w3_ref[...], h2.astype(w3_ref.dtype),
        dimension_numbers=(((1,), (1,)), ((), ())),
        preferred_element_type=jnp.float32)                      # (8, TB)
    o_ref[...] = (head[0:1, :] + b3_ref[0]).astype(o_ref.dtype)  # (1, TB)


@functools.partial(jax.jit, static_argnames=("tile_b",))
def pytorch_nn_forward(x, params, tile_b=512):
    """Eval-mode forward of PyTorchNN as a single fused Pallas kernel.

    x: (B, D) float32.  B is padded internally to a multiple of tile_b.
    params: output of fold_params() (pre-transposed, BN-folded, bf16 weights).
    """
    assert tile_b % 128 == 0, "tile_b must be a multiple of 128 (lane width)"
    B, D = x.shape
    w1t, b1 = params["w1t"], params["b1"]
    w2f, b2f = params["w2f"], params["b2f"]
    w3p, b3f = params["w3p"], params["b3f"]
    H1, H2 = w1t.shape[1], w2f.shape[1]

    # Pad the batch to a whole number of tiles; keep the parallel grid even
    # (when > 1) so both v7x TensorCores get work.
    n_tiles = pl.cdiv(B, tile_b)
    if n_tiles > 1 and n_tiles % 2:
        n_tiles += 1
    B_pad = n_tiles * tile_b

    xc = x.astype(w1t.dtype)                       # bf16 activations (half the DMA)
    if B_pad != B:
        xc = jnp.pad(xc, ((0, B_pad - B), (0, 0)))

    out = pl.pallas_call(
        _mlp_kernel,
        out_shape=jax.ShapeDtypeStruct((1, B_pad), jnp.float32),
        grid_spec=pltpu.PrefetchScalarGridSpec(
            num_scalar_prefetch=0,
            grid=(n_tiles,),
            in_specs=[
                pl.BlockSpec((tile_b, D), lambda i: (i, 0)),   # x tile (streamed)
                pl.BlockSpec((D, H1), lambda i: (0, 0)),       # W1^T   (resident)
                pl.BlockSpec((1, H1), lambda i: (0, 0)),       # b1
                pl.BlockSpec((H1, H2), lambda i: (0, 0)),      # W2^T with BN1 folded
                pl.BlockSpec((1, H2), lambda i: (0, 0)),       # b2 with BN1 folded
                pl.BlockSpec((8, H2), lambda i: (0, 0)),       # w3 row (BN2 folded, padded to 8 sublanes)
                pl.BlockSpec(memory_space=pltpu.MemorySpace.SMEM),  # b3 scalar
            ],
            out_specs=pl.BlockSpec((1, tile_b), lambda i: (0, i)),  # lane-dense output row
        ),
        compiler_params=pltpu.CompilerParams(
            dimension_semantics=("parallel",)),
    )(xc, w1t, b1, w2f, b2f, w3p, b3f)

    return out[0, :B].reshape(B, 1)


def init_raw_params(key, input_dim, hidden_dims=(128, 64)):
    """Deterministic synthetic parameters matching PyTorchNN's shapes (PyTorch layout)."""
    H1, H2 = hidden_dims
    ks = jax.random.split(key, 14)

    def linear(kw, kb, fan_in, fan_out):
        bound = 1.0 / jnp.sqrt(fan_in)
        w = jax.random.uniform(kw, (fan_out, fan_in), jnp.float32, -bound, bound)
        b = jax.random.uniform(kb, (fan_out,), jnp.float32, -bound, bound)
        return w, b

    w1, b1 = linear(ks[0], ks[1], input_dim, H1)
    w2, b2 = linear(ks[2], ks[3], H1, H2)
    w3, b3 = linear(ks[4], ks[5], H2, 1)

    def bn(kg, kb, km, kv, dim):
        gamma = 1.0 + 0.1 * jax.random.normal(kg, (dim,), jnp.float32)
        beta = 0.1 * jax.random.normal(kb, (dim,), jnp.float32)
        mean = 0.1 * jax.random.normal(km, (dim,), jnp.float32)
        var = 1.0 + 0.1 * jax.random.uniform(kv, (dim,), jnp.float32)
        return gamma, beta, mean, var

    g1, be1, m1, v1 = bn(ks[6], ks[7], ks[8], ks[9], H1)
    g2, be2, m2, v2 = bn(ks[10], ks[11], ks[12], ks[13], H2)

    return dict(w1=w1, b1=b1, w2=w2, b2=b2, w3=w3, b3=b3,
                g1=g1, be1=be1, m1=m1, v1=v1,
                g2=g2, be2=be2, m2=m2, v2=v2)


def fold_params(raw, eps=1e-5, compute_dtype=jnp.bfloat16):
    """Fold eval-mode BatchNorm into the following Linear; transpose & cast weights.

    Done once at param-prep time (exact in f32); matmul operands are cast to
    `compute_dtype`, bias vectors stay f32.
    """
    w1, b1 = raw["w1"], raw["b1"]
    w2, b2 = raw["w2"], raw["b2"]
    w3, b3 = raw["w3"], raw["b3"]

    s1 = raw["g1"] / jnp.sqrt(raw["v1"] + eps)
    t1 = raw["be1"] - raw["m1"] * s1
    s2 = raw["g2"] / jnp.sqrt(raw["v2"] + eps)
    t2 = raw["be2"] - raw["m2"] * s2

    w1t = w1.T                                   # (D, H1)
    w2t = w2.T                                   # (H1, H2)
    w3r = w3[0]                                  # (H2,)

    w2f = s1[:, None] * w2t                      # BN1 folded into layer 2
    b2f = b2 + t1 @ w2t
    w3f = s2 * w3r                               # BN2 folded into head
    b3f = b3 + jnp.dot(t2, w3r)                  # (1,) scalar

    H1, H2 = w1t.shape[1], w2f.shape[1]
    # Pad the head weight row to 8 sublanes (rows 1..7 zero) for MXU alignment.
    w3p = jnp.zeros((8, H2), jnp.float32).at[0].set(w3f)

    return {
        "w1t": w1t.astype(compute_dtype),
        "b1": b1.reshape(1, H1).astype(jnp.float32),
        "w2f": w2f.astype(compute_dtype),
        "b2f": b2f.reshape(1, H2).astype(jnp.float32),
        "w3p": w3p.astype(compute_dtype),
        "b3f": b3f.astype(jnp.float32),
    }


def reference_forward(x, raw, eps=1e-5):
    """Pure-JAX f32 reference mirroring the PyTorch module in eval mode."""
    h = jnp.maximum(x @ raw["w1"].T + raw["b1"], 0.0)
    h = (h - raw["m1"]) * (raw["g1"] / jnp.sqrt(raw["v1"] + eps)) + raw["be1"]
    h = jnp.maximum(h @ raw["w2"].T + raw["b2"], 0.0)
    h = (h - raw["m2"]) * (raw["g2"] / jnp.sqrt(raw["v2"] + eps)) + raw["be2"]
    return h @ raw["w3"].T + raw["b3"]


def folded_forward_ref(x, p):
    """Pure-JAX mirror of the kernel's exact numerics (bf16 operands, f32 accum)."""
    cd = p["w1t"].dtype
    h1 = jnp.dot(x.astype(cd), p["w1t"], preferred_element_type=jnp.float32)
    h1 = jnp.maximum(h1 + p["b1"], 0.0)
    h2 = jnp.dot(h1.astype(cd), p["w2f"], preferred_element_type=jnp.float32)
    h2 = jnp.maximum(h2 + p["b2f"], 0.0)
    y = jnp.dot(h2.astype(cd), p["w3p"][0][:, None],
                preferred_element_type=jnp.float32)
    return y + p["b3f"][0]


if __name__ == "__main__":
    key = jax.random.PRNGKey(0)
    k_x, k_p = jax.random.split(key)

    batch, input_dim = 600, 32          # hidden_dims = [128, 64]
    x = jax.random.normal(k_x, (batch, input_dim), jnp.float32)

    raw = init_raw_params(k_p, input_dim)
    params = fold_params(raw, compute_dtype=jnp.bfloat16)

    out = pytorch_nn_forward(x, params, tile_b=256)   # 600 -> padded to 4 tiles
    out = jax.block_until_ready(out)
    assert out.shape == (batch, 1), out.shape

    # Tight check against a JAX mirror of the kernel's exact numerics.
    ref_folded = folded_forward_ref(x, params)
    assert jnp.allclose(out, ref_folded, atol=1e-3, rtol=1e-3), (
        "Pallas kernel mismatch vs folded-bf16 reference")

    # Loose check against the full-precision eval-mode PyTorch semantics
    # (slack accounts for bf16 matmul operands).
    ref_f32 = reference_forward(x, raw)
    assert jnp.allclose(out, ref_f32, atol=5e-2, rtol=5e-2), (
        "Pallas kernel mismatch vs f32 reference")

    print("KERNEL_OK")
</pallas_src>

<mosaic_0001>
module attributes {stable_mosaic.version = 11 : i64} {
  func.func @_mlp_kernel(%arg0: i32, %arg1: memref<256x32xbf16, #tpu.memory_space<vmem>>, %arg2: memref<32x128xbf16, #tpu.memory_space<vmem>>, %arg3: memref<1x128xf32, #tpu.memory_space<vmem>>, %arg4: memref<128x64xbf16, #tpu.memory_space<vmem>>, %arg5: memref<1x64xf32, #tpu.memory_space<vmem>>, %arg6: memref<8x64xbf16, #tpu.memory_space<vmem>>, %arg7: memref<1xf32, #tpu.memory_space<smem>>, %arg8: memref<1x256xf32, #tpu.memory_space<vmem>>) attributes {dimension_semantics = [#tpu.dimension_semantics<parallel>], iteration_bounds = array<i64: 4>, scalar_prefetch = 0 : i64, scratch_operands = 0 : i64, tpu.core_type = #tpu.core_type<tc>, window_params = [{transform_indices = @transform_0, window_bounds = array<i64: 256, 32>}, {pipeline_mode = #tpu.pipeline_mode<synchronous>, transform_indices = @transform_1, window_bounds = array<i64: 32, 128>}, {pipeline_mode = #tpu.pipeline_mode<synchronous>, transform_indices = @transform_2, window_bounds = array<i64: 1, 128>}, {pipeline_mode = #tpu.pipeline_mode<synchronous>, transform_indices = @transform_3, window_bounds = array<i64: 128, 64>}, {pipeline_mode = #tpu.pipeline_mode<synchronous>, transform_indices = @transform_4, window_bounds = array<i64: 1, 64>}, {pipeline_mode = #tpu.pipeline_mode<synchronous>, transform_indices = @transform_5, window_bounds = array<i64: 8, 64>}, {transform_indices = @transform_6, window_bounds = array<i64: 1>}, {transform_indices = @transform_7, window_bounds = array<i64: 1, 256>}]} {
    %c0 = arith.constant 0 : index
    %c0_0 = arith.constant 0 : index
    %0 = vector.load %arg1[%c0, %c0_0] : memref<256x32xbf16, #tpu.memory_space<vmem>>, vector<256x32xbf16>
    %c0_1 = arith.constant 0 : index
    %c0_2 = arith.constant 0 : index
    %1 = vector.load %arg2[%c0_1, %c0_2] : memref<32x128xbf16, #tpu.memory_space<vmem>>, vector<32x128xbf16>
    %cst = arith.constant dense<0.000000e+00> : vector<256x128xf32>
    %2 = tpu.matmul %0, %1, %cst {dimension_numbers = #tpu.dot_dimension_numbers<[1], [0], [0], [1], [0, 0, 1, 1], [], []>} : vector<256x32xbf16>, vector<32x128xbf16>, vector<256x128xf32> -> vector<256x128xf32>
    %c0_3 = arith.constant 0 : index
    %c0_4 = arith.constant 0 : index
    %3 = vector.load %arg3[%c0_3, %c0_4] : memref<1x128xf32, #tpu.memory_space<vmem>>, vector<1x128xf32>
    %4 = vector.broadcast %3 : vector<1x128xf32> to vector<256x128xf32>
    %5 = arith.addf %2, %4 : vector<256x128xf32>
    %cst_5 = arith.constant 0.000000e+00 : f32
    %6 = vector.broadcast %cst_5 : f32 to vector<256x128xf32>
    %7 = arith.maximumf %5, %6 : vector<256x128xf32>
    %8 = arith.truncf %7 : vector<256x128xf32> to vector<256x128xbf16>
    %c0_6 = arith.constant 0 : index
    %c0_7 = arith.constant 0 : index
    %9 = vector.load %arg4[%c0_6, %c0_7] : memref<128x64xbf16, #tpu.memory_space<vmem>>, vector<128x64xbf16>
    %cst_8 = arith.constant dense<0.000000e+00> : vector<256x64xf32>
    %10 = tpu.matmul %8, %9, %cst_8 {dimension_numbers = #tpu.dot_dimension_numbers<[1], [0], [0], [1], [0, 0, 1, 1], [], []>} : vector<256x128xbf16>, vector<128x64xbf16>, vector<256x64xf32> -> vector<256x64xf32>
    %c0_9 = arith.constant 0 : index
    %c0_10 = arith.constant 0 : index
    %11 = vector.load %arg5[%c0_9, %c0_10] : memref<1x64xf32, #tpu.memory_space<vmem>>, vector<1x64xf32>
    %12 = vector.broadcast %11 : vector<1x64xf32> to vector<256x64xf32>
    %13 = arith.addf %10, %12 : vector<256x64xf32>
    %cst_11 = arith.constant 0.000000e+00 : f32
    %14 = vector.broadcast %cst_11 : f32 to vector<256x64xf32>
    %15 = arith.maximumf %13, %14 : vector<256x64xf32>
    %c0_12 = arith.constant 0 : index
    %c0_13 = arith.constant 0 : index
    %16 = vector.load %arg6[%c0_12, %c0_13] : memref<8x64xbf16, #tpu.memory_space<vmem>>, vector<8x64xbf16>
    %17 = arith.truncf %15 : vector<256x64xf32> to vector<256x64xbf16>
    %cst_14 = arith.constant dense<0.000000e+00> : vector<8x256xf32>
    %18 = tpu.matmul %16, %17, %cst_14 {dimension_numbers = #tpu.dot_dimension_numbers<[1], [1], [0], [0], [0, 0, 1, 0], [], []>} : vector<8x64xbf16>, vector<256x64xbf16>, vector<8x256xf32> -> vector<8x256xf32>
    %19 = vector.extract_strided_slice %18 {offsets = [0, 0], sizes = [1, 256], strides = [1, 1]} : vector<8x256xf32> to vector<1x256xf32>
    %c0_15 = arith.constant 0 : index
    %20 = memref.load %arg7[%c0_15] : memref<1xf32, #tpu.memory_space<smem>>
    %21 = vector.broadcast %20 : f32 to vector<1x256xf32>
    %22 = arith.addf %19, %21 : vector<1x256xf32>
    %c0_16 = arith.constant 0 : index
    %c0_17 = arith.constant 0 : index
    %23 = vector.load %arg8[%c0_16, %c0_17] : memref<1x256xf32, #tpu.memory_space<vmem>>, vector<1x256xf32>
    tpu.vector_store %arg8[%c0_16, %c0_17], %22 {strides = array<i32>} : memref<1x256xf32, #tpu.memory_space<vmem>>, vector<1x256xf32>,
    return
  }
  func.func @transform_0(%arg0: i32) -> (i32, i32) {
    %c0_i32 = arith.constant 0 : i32
    %c0_i32_0 = arith.constant 0 : i32
    return %arg0, %c0_i32 : i32, i32
  }
  func.func @transform_1(%arg0: i32) -> (i32, i32) {
    %c0_i32 = arith.constant 0 : i32
    %c0_i32_0 = arith.constant 0 : i32
    %c0_i32_1 = arith.constant 0 : i32
    return %c0_i32, %c0_i32_0 : i32, i32
  }
  func.func @transform_2(%arg0: i32) -> (i32, i32) {
    %c0_i32 = arith.constant 0 : i32
    %c0_i32_0 = arith.constant 0 : i32
    %c0_i32_1 = arith.constant 0 : i32
    return %c0_i32, %c0_i32_0 : i32, i32
  }
  func.func @transform_3(%arg0: i32) -> (i32, i32) {
    %c0_i32 = arith.constant 0 : i32
    %c0_i32_0 = arith.constant 0 : i32
    %c0_i32_1 = arith.constant 0 : i32
    return %c0_i32, %c0_i32_0 : i32, i32
  }
  func.func @transform_4(%arg0: i32) -> (i32, i32) {
    %c0_i32 = arith.constant 0 : i32
    %c0_i32_0 = arith.constant 0 : i32
    %c0_i32_1 = arith.constant 0 : i32
    return %c0_i32, %c0_i32_0 : i32, i32
  }
  func.func @transform_5(%arg0: i32) -> (i32, i32) {
    %c0_i32 = arith.constant 0 : i32
    %c0_i32_0 = arith.constant 0 : i32
    %c0_i32_1 = arith.constant 0 : i32
    return %c0_i32, %c0_i32_0 : i32, i32
  }
  func.func @transform_6(%arg0: i32) -> i32 {
    %c0_i32 = arith.constant 0 : i32
    %c0_i32_0 = arith.constant 0 : i32
    return %c0_i32 : i32
  }
  func.func @transform_7(%arg0: i32) -> (i32, i32) {
    %c0_i32 = arith.constant 0 : i32
    %c0_i32_0 = arith.constant 0 : i32
    return %c0_i32, %arg0 : i32, i32
  }
}

</mosaic_0001>

<bundles_post_ra>
// kernel: pytorch_nn_forward.1
= control target key start
LH: loop header
LB: loop body
LE: loop exit
PB: predicated region body
PF: predicated region fallthrough
CT: control target
= control target key end

     0   :  { %s1420_s26 = smov 0   ;;  %s1628_s0 = inlined_call_operand.vmem [shape: bf16[1024,32], index: 0, kind: input, shape index: {}]   ;;  %s1629_s1 = inlined_call_operand.vmem [shape: bf16[32,128], index: 1, kind: input, shape index: {}]   ;;  %s1630_s2 = inlined_call_operand.vmem [shape: f32[1,128], index: 2, kind: input, shape index: {}]   ;;  %s1631_s3 = inlined_call_operand.vmem [shape: bf16[128,64], index: 3, kind: input, shape index: {}]   ;;  %s1632_s4 = inlined_call_operand.vmem [shape: f32[1,64], index: 4, kind: input, shape index: {}]   ;;  %s1633_s5 = inlined_call_operand.vmem [shape: bf16[8,64], index: 5, kind: input, shape index: {}]   ;;  %s1634_s6 = inlined_call_operand.<no memory space> [shape: f32[1], index: 6, kind: input, shape index: {}]   ;;  %s1635_s7 = inlined_call_operand.vmem [shape: f32[1,1024], index: 7, kind: output, shape index: {}]  }
   0x1   :  { %12 = sst [smem:[#allocation2]] %s1634_s6 }
   0x2 LB: > { %s1126_s27 = sadd.s32 4294967295, %s1374_s26   ;;  %p1130_p0 = scmp.ge.s32.totalorder %s1374_s26, 1  ;;  %s1374_s26 = sphi %s1420_s26, %s18_s26  }
   0x3   : > { %p239_p1 = scmp.lt.s32.totalorder %s1374_s26, 5 }
   0x5   : > { %p240_p2 = pnand %p1130_p0, %p239_p1 }
   0x6   : > { %v1342_v0 = vld [vmem:[%s1629_s1] sm:$0xff] (!%p240_p2)   ;;  %s1131_s6 = sshll.u32 (!%p240_p2), %s1126_s27, 5  ;;  %v1343_v1 = vld [vmem:[%s1629_s1 + $0x8] sm:$0xff] (!%p240_p2)   ;;  %vm417_vm0 = vcmask (!%p240_p2), 261120   ;;  %v1362_v4 = vld [vmem:[%s1631_s3 + $0x10] sm:$0xff] (!%p240_p2)   ;;  %vm956_vm1 = vcmask (!%p240_p2), 523264  }
   0x7   : > { %243 = sbr.rel (%p240_p2) target bundleno = 780 (0x30c), region = 48  ;;  %p271_p3 = scmp.lt.s32.totalorder (!%p240_p2), %s1131_s6, 127  ;;  %1241 = vmatprep.subr.bf16.mxu0 (!%p240_p2), %v1342_v0  ;;  %v1360_v2 = vld [vmem:[%s1631_s3] sm:$0xff] (!%p240_p2)   ;;  %v1361_v3 = vld [vmem:[%s1631_s3 + $0x8] sm:$0xff] (!%p240_p2)   ;;  %v1363_v8 = vld [vmem:[%s1631_s3 + $0x18] sm:$0xff] (!%p240_p2)  }
   0x8   : > { %1242 = vmatpush3.bf16.msra.mxu0 (!%p240_p2), %v1342_v0  ;;  %1277 = vmatprep.subr.bf16.mxu1 (!%p240_p2), %v1360_v2  ;;  %v1364_v9 = vld [vmem:[%s1631_s3 + $0x20] sm:$0xff] (!%p240_p2)   ;;  %v1365_v14 = vld [vmem:[%s1631_s3 + $0x28] sm:$0xff] (!%p240_p2)   ;;  %v1366_v24 = vld [vmem:[%s1631_s3 + $0x30] sm:$0xff] (!%p240_p2)   ;;  %s1133_s14 = sshll.u32 (!%p240_p2), %s1126_s27, 1 }
   0x9   : > { %1243 = vmatprep.subr.bf16.mxu0 (!%p240_p2), %v1343_v1  ;;  %1278 = vmatpush3.bf16.msra.mxu1 (!%p240_p2), %v1360_v2  ;;  %v1367_v25 = vld [vmem:[%s1631_s3 + $0x38] sm:$0xff] (!%p240_p2)   ;;  %v1500_v26 = vld [vmem:[%s1630_s2] ss:$0 sm:$0xff] (!%p240_p2)  ;;  %p277_p4 = scmp.lt.s32.totalorder (!%p240_p2), %s1133_s14, 7 }
   0xa   : > { %1279 = vmatprep.subr.bf16.mxu1 (!%p240_p2), %v1361_v3 }
   0xc   : > { %1244 = vmatpush3.bf16.msra.mxu0 (!%p240_p2), %v1343_v1 }
   0xd   : > { %1280 = vmatpush3.bf16.msra.mxu1 (!%p240_p2), %v1361_v3 }
   0xe   : > { %s1637_s6 = smov (!%p271_p3, %s1131_s6), 127  ;;  %1281 = vmatprep.subr.bf16.mxu1 %v1362_v4  ;;  %s1639_s14 = smov (!%p277_p4, %s1133_s14), 7 }
   0xf   : > { %s1132_s13 = sshll.u32 %s1637_s6, 2  ;;  %s279_s17 = scalar_lea.vmem %s1635_s7, %s1639_s14 }
  0x10   : > { %s1445_s16 = scalar_lea.vmem %s1628_s0, %s1132_s13  ;;  %s1049_s13 = sld [smem:[#allocation2]] }
  0x11   : > { %v1344_v5 = vld [vmem:[%s1445_s16] sm:$0xff]   ;;  %v1345_v6 = vld [vmem:[%s1445_s16 + $0x8] sm:$0xff]   ;;  %v1346_v7 = vld [vmem:[%s1445_s16 + $0x10] sm:$0xff]   ;;  %1282 = vmatpush3.bf16.msra.mxu1 %v1362_v4 }
  0x12   : > { %1245 = vmatprep.mubr.msk.bf16.mxu0 %vm417_vm0, %v1344_v5  ;;  %v1347_v10 = vld [vmem:[%s1445_s16 + $0x18] sm:$0xff]   ;;  %1283 = vmatprep.subr.bf16.mxu1 %v1363_v8  ;;  %v1348_v11 = vld [vmem:[%s1445_s16 + $0x20] sm:$0xff]   ;;  %v1349_v12 = vld [vmem:[%s1445_s16 + $0x28] sm:$0xff]  }
  0x13   : > { %1246 = vmatmul.mubr.msk.bf16.vlgmr.msra.gmra.mrb[0].mxu0 %vm417_vm0, %v1345_v6  ;;  %v1350_v13 = vld [vmem:[%s1445_s16 + $0x30] sm:$0xff]   ;;  %v1351_v15 = vld [vmem:[%s1445_s16 + $0x38] sm:$0xff]   ;;  %v1352_v16 = vld [vmem:[%s1445_s16 + $0x40] sm:$0xff]  }
  0x14   : > { %1249 = vmatprep.mubr.msk.bf16.mxu0 %vm417_vm0, %v1346_v7  ;;  %v1353_v17 = vld [vmem:[%s1445_s16 + $0x48] sm:$0xff]   ;;  %v1354_v18 = vld [vmem:[%s1445_s16 + $0x50] sm:$0xff]   ;;  %v1355_v19 = vld [vmem:[%s1445_s16 + $0x58] sm:$0xff]  }
  0x15   : > { %1284 = vmatpush3.bf16.msra.mxu1 %v1363_v8  ;;  %v1356_v20 = vld [vmem:[%s1445_s16 + $0x60] sm:$0xff]   ;;  %v1357_v21 = vld [vmem:[%s1445_s16 + $0x68] sm:$0xff]   ;;  %v1358_v22 = vld [vmem:[%s1445_s16 + $0x70] sm:$0xff]  }
  0x16   : > { %1285 = vmatprep.subr.bf16.mxu1 %v1364_v9  ;;  %v1359_v23 = vld [vmem:[%s1445_s16 + $0x78] sm:$0xff]  }
  0x19   : > { %1286 = vmatpush3.bf16.msra.mxu1 %v1364_v9 }
  0x1a   : > { %1287 = vmatprep.subr.bf16.mxu1 %v1365_v14 }
  0x1b   : > { %1250 = vmatmul.mubr.msk.bf16.gmra.mrb[4].mxu0 %vm417_vm0, %v1347_v10 }
  0x1c   : > { %1253 = vmatprep.mubr.msk.bf16.mxu0 %vm417_vm0, %v1348_v11 }
  0x1d   : > { %1288 = vmatpush3.bf16.msra.mxu1 %v1365_v14 }
  0x1e   : > { %1289 = vmatprep.subr.bf16.mxu1 %v1366_v24 }
  0x21   : > { %1290 = vmatpush3.bf16.msra.mxu1 %v1366_v24 }
  0x22   : > { %1291 = vmatprep.subr.bf16.mxu1 %v1367_v25 }
  0x23   : > { %1254 = vmatmul.mubr.msk.bf16.gmra.mrb[8].mxu0 %vm417_vm0, %v1349_v12 }
  0x24   : > { %1257 = vmatprep.mubr.msk.bf16.mxu0 %vm417_vm0, %v1350_v13 }
  0x25   : > { %1292 = vmatpush3.bf16.msra.mxu1 %v1367_v25 }
  0x2b   : > { %1258 = vmatmul.mubr.msk.bf16.gmra.mrb[12].mxu0 %vm417_vm0, %v1351_v15 }
  0x2c   : > { %1261 = vmatprep.mubr.msk.bf16.mxu0 %vm417_vm0, %v1352_v16 }
  0x33   : > { %1262 = vmatmul.mubr.msk.bf16.gmra.mrb[16].mxu0 %vm417_vm0, %v1353_v17 }
  0x34   : > { %1265 = vmatprep.mubr.msk.bf16.mxu0 %vm417_vm0, %v1354_v18 }
  0x3b   : > { %1266 = vmatmul.mubr.msk.bf16.gmra.mrb[20].mxu0 %vm417_vm0, %v1355_v19 }
  0x3c   : > { %1269 = vmatprep.mubr.msk.bf16.mxu0 %vm417_vm0, %v1356_v20 }
  0x43   : > { %1270 = vmatmul.mubr.msk.bf16.gmra.mrb[24].mxu0 %vm417_vm0, %v1357_v21 }
  0x44   : > { %1273 = vmatprep.mubr.msk.bf16.mxu0 %vm417_vm0, %v1358_v22 }
  0x4b   : > { %1274 = vmatmul.mubr.msk.bf16.gmra.mrb[28].mxu0 %vm417_vm0, %v1359_v23 }
  0xe6   : > { %v1247_v27 = vpop.f32.mrb[0].mxu0 }
  0xe7   : > { %v509_v28 = vadd.f32 %v1247_v27, %v1500_v26  ;;  %v500_v29 = vpop.f32.mrb[1].mxu0 }
  0xe8   : > { %v501_v30 = vadd.f32 %v1500_v26, %v500_v29  ;;  %v1248_v31 = vpop.f32.mrb[2].mxu0 }
  0xe9   : > { %v512_v32 = vadd.f32 %v1248_v31, %v1500_v26  ;;  %v503_v33 = vpop.f32.mrb[3].mxu0  ;;  %v629_v35 = vmax.f32 %v509_v28, 0.0 }
  0xea   : > { %v504_v34 = vadd.f32 %v1500_v26, %v503_v33  ;;  %v627_v37 = vmax.f32 %v501_v30, 0.0 }
  0xeb   : > { %v630_v36 = vmax.f32 %v512_v32, 0.0 }
  0xec   : > { %v628_v38 = vmax.f32 %v504_v34, 0.0 }
  0xed   : > { %v660_v39 = vpack.c.bf16 %v630_v36, %v629_v35 }
  0xee   : > { %v1251_v40 = vpop.f32.mrb[4].mxu0  ;;  %v659_v41 = vpack.c.bf16 %v628_v38, %v627_v37 }
  0xef   : > { %v525_v42 = vadd.f32 %v1251_v40, %v1500_v26  ;;  %v516_v43 = vpop.f32.mrb[5].mxu0 }
  0xf0   : > { %v517_v44 = vadd.f32 %v1500_v26, %v516_v43  ;;  %v1252_v45 = vpop.f32.mrb[6].mxu0  ;;  %1293 = vmatprep.mubr.bf16.mxu1 %v659_v41 }
  0xf1   : > { %v528_v46 = vadd.f32 %v1252_v45, %v1500_v26  ;;  %v519_v47 = vpop.f32.mrb[7].mxu0  ;;  %1294 = vmatmul.mubr.bf16.vlgmr.msra.gmra.mrb[0].mxu1 %v660_v39  ;;  %v633_v49 = vmax.f32 %v525_v42, 0.0 }
  0xf2   : > { %v520_v48 = vadd.f32 %v1500_v26, %v519_v47  ;;  %v631_v51 = vmax.f32 %v517_v44, 0.0 }
  0xf3   : > { %v634_v50 = vmax.f32 %v528_v46, 0.0 }
  0xf4   : > { %v632_v52 = vmax.f32 %v520_v48, 0.0 }
  0xf5   : > { %v662_v53 = vpack.c.bf16 %v634_v50, %v633_v49 }
  0xf6   : > { %v661_v54 = vpack.c.bf16 %v632_v52, %v631_v51  ;;  %v1255_v55 = vpop.f32.mrb[8].mxu0 }
  0xf7   : > { %v541_v56 = vadd.f32 %v1255_v55, %v1500_v26  ;;  %v532_v57 = vpop.f32.mrb[9].mxu0 }
  0xf8   : > { %v533_v58 = vadd.f32 %v1500_v26, %v532_v57  ;;  %v1256_v59 = vpop.f32.mrb[10].mxu0  ;;  %1297 = vmatprep.mubr.bf16.mxu1 %v661_v54 }
  0xf9   : > { %v544_v60 = vadd.f32 %v1256_v59, %v1500_v26  ;;  %v535_v61 = vpop.f32.mrb[11].mxu0  ;;  %1298 = vmatmul.mubr.bf16.gmra.mrb[4].mxu1 %v662_v53  ;;  %v637_v63 = vmax.f32 %v541_v56, 0.0 }
  0xfa   : > { %v536_v62 = vadd.f32 %v1500_v26, %v535_v61  ;;  %v635_v1 = vmax.f32 %v533_v58, 0.0 }
  0xfb   : > { %v638_v0 = vmax.f32 %v544_v60, 0.0 }
  0xfc   : > { %v636_v2 = vmax.f32 %v536_v62, 0.0 }
  0xfd   : > { %v664_v3 = vpack.c.bf16 %v638_v0, %v637_v63 }
  0xfe   : > { %v663_v4 = vpack.c.bf16 %v636_v2, %v635_v1  ;;  %v1259_v5 = vpop.f32.mrb[12].mxu0 }
  0xff   : > { %v557_v6 = vadd.f32 %v1259_v5, %v1500_v26  ;;  %v548_v7 = vpop.f32.mrb[13].mxu0 }
 0x100   : > { %v549_v8 = vadd.f32 %v1500_v26, %v548_v7  ;;  %v1260_v9 = vpop.f32.mrb[14].mxu0  ;;  %1301 = vmatprep.mubr.bf16.mxu1 %v663_v4 }
 0x101   : > { %v560_v10 = vadd.f32 %v1260_v9, %v1500_v26  ;;  %v551_v11 = vpop.f32.mrb[15].mxu0  ;;  %1302 = vmatmul.mubr.bf16.gmra.mrb[8].mxu1 %v664_v3  ;;  %v641_v13 = vmax.f32 %v557_v6, 0.0 }
 0x102   : > { %v552_v12 = vadd.f32 %v1500_v26, %v551_v11  ;;  %v639_v15 = vmax.f32 %v549_v8, 0.0 }
 0x103   : > { %v642_v14 = vmax.f32 %v560_v10, 0.0 }
 0x104   : > { %v640_v16 = vmax.f32 %v552_v12, 0.0  ;;  %v1537_v12 = vld [vmem:[%s1633_s5] sm:$0xf] }
 0x105   : > { %v666_v17 = vpack.c.bf16 %v642_v14, %v641_v13  ;;  %1239 = vmatprep.mubr.msk.bf16.mxu0 %vm956_vm1, %v1537_v12  ;;  %v1544_v13 = vld [vmem:[%s1632_s4] ss:$0 sm:$0xff] }
 0x106   : > { %v665_v18 = vpack.c.bf16 %v640_v16, %v639_v15  ;;  %v1263_v19 = vpop.f32.mrb[16].mxu0 }
 0x107   : > { %v573_v20 = vadd.f32 %v1263_v19, %v1500_v26  ;;  %v564_v21 = vpop.f32.mrb[17].mxu0 }
 0x108   : > { %v565_v22 = vadd.f32 %v1500_v26, %v564_v21  ;;  %v1264_v23 = vpop.f32.mrb[18].mxu0  ;;  %1305 = vmatprep.mubr.bf16.mxu1 %v665_v18 }
 0x109   : > { %v576_v24 = vadd.f32 %v1264_v23, %v1500_v26  ;;  %v567_v25 = vpop.f32.mrb[19].mxu0  ;;  %1306 = vmatmul.mubr.bf16.gmra.mrb[12].mxu1 %v666_v17  ;;  %v645_v28 = vmax.f32 %v573_v20, 0.0 }
 0x10a   : > { %v568_v27 = vadd.f32 %v1500_v26, %v567_v25  ;;  %v643_v30 = vmax.f32 %v565_v22, 0.0 }
 0x10b   : > { %v646_v29 = vmax.f32 %v576_v24, 0.0 }
 0x10c   : > { %v644_v31 = vmax.f32 %v568_v27, 0.0 }
 0x10d   : > { %v668_v32 = vpack.c.bf16 %v646_v29, %v645_v28 }
 0x10e   : > { %v667_v33 = vpack.c.bf16 %v644_v31, %v643_v30  ;;  %v1267_v34 = vpop.f32.mrb[20].mxu0 }
 0x10f   : > { %v589_v35 = vadd.f32 %v1267_v34, %v1500_v26  ;;  %v580_v36 = vpop.f32.mrb[21].mxu0 }
 0x110   : > { %v581_v37 = vadd.f32 %v1500_v26, %v580_v36  ;;  %1309 = vmatprep.mubr.bf16.mxu1 %v667_v33  ;;  %v1268_v38 = vpop.f32.mrb[22].mxu0 }
 0x111   : > { %v649_v39 = vmax.f32 %v589_v35, 0.0  ;;  %v592_v40 = vadd.f32 %v1268_v38, %v1500_v26  ;;  %1310 = vmatmul.mubr.bf16.gmra.mrb[16].mxu1 %v668_v32  ;;  %v583_v41 = vpop.f32.mrb[23].mxu0 }
 0x112   : > { %v647_v42 = vmax.f32 %v581_v37, 0.0  ;;  %v584_v43 = vadd.f32 %v1500_v26, %v583_v41 }
 0x113   : > { %v650_v44 = vmax.f32 %v592_v40, 0.0 }
 0x114   : > { %v648_v45 = vmax.f32 %v584_v43, 0.0 }
 0x115   : > { %v670_v46 = vpack.c.bf16 %v650_v44, %v649_v39 }
 0x116   : > { %v669_v47 = vpack.c.bf16 %v648_v45, %v647_v42  ;;  %v1271_v48 = vpop.f32.mrb[24].mxu0 }
 0x117   : > { %v605_v49 = vadd.f32 %v1271_v48, %v1500_v26  ;;  %v596_v50 = vpop.f32.mrb[25].mxu0 }
 0x118   : > { %1313 = vmatprep.mubr.bf16.mxu1 %v669_v47  ;;  %v597_v51 = vadd.f32 %v1500_v26, %v596_v50  ;;  %v1272_v52 = vpop.f32.mrb[26].mxu0 }
 0x119   : > { %1314 = vmatmul.mubr.bf16.gmra.mrb[20].mxu1 %v670_v46  ;;  %v653_v53 = vmax.f32 %v605_v49, 0.0  ;;  %v608_v54 = vadd.f32 %v1272_v52, %v1500_v26  ;;  %v599_v55 = vpop.f32.mrb[27].mxu0 }
 0x11a   : > { %v651_v56 = vmax.f32 %v597_v51, 0.0  ;;  %v600_v57 = vadd.f32 %v1500_v26, %v599_v55 }
 0x11b   : > { %v654_v58 = vmax.f32 %v608_v54, 0.0 }
 0x11c   : > { %v652_v59 = vmax.f32 %v600_v57, 0.0 }
 0x11d   : > { %v672_v60 = vpack.c.bf16 %v654_v58, %v653_v53 }
 0x11e   : > { %v671_v61 = vpack.c.bf16 %v652_v59, %v651_v56  ;;  %v1275_v62 = vpop.f32.mrb[28].mxu0 }
 0x11f   : > { %v621_v63 = vadd.f32 %v1275_v62, %v1500_v26  ;;  %v612_v0 = vpop.f32.mrb[29].mxu0 }
 0x120   : > { %1317 = vmatprep.mubr.bf16.mxu1 %v671_v61  ;;  %v613_v1 = vadd.f32 %v1500_v26, %v612_v0  ;;  %v1276_v2 = vpop.f32.mrb[30].mxu0 }
 0x121   : > { %1318 = vmatmul.mubr.bf16.gmra.mrb[24].mxu1 %v672_v60  ;;  %v657_v3 = vmax.f32 %v621_v63, 0.0  ;;  %v624_v4 = vadd.f32 %v1276_v2, %v1500_v26  ;;  %v615_v5 = vpop.f32.mrb[31].mxu0 }
 0x122   : > { %v655_v6 = vmax.f32 %v613_v1, 0.0  ;;  %v616_v7 = vadd.f32 %v1500_v26, %v615_v5 }
 0x123   : > { %v658_v8 = vmax.f32 %v624_v4, 0.0 }
 0x124   : > { %v656_v9 = vmax.f32 %v616_v7, 0.0 }
 0x125   : > { %v674_v10 = vpack.c.bf16 %v658_v8, %v657_v3 }
 0x126   : > { %v673_v11 = vpack.c.bf16 %v656_v9, %v655_v6 }
 0x128   : > { %1321 = vmatprep.mubr.bf16.mxu1 %v673_v11 }
 0x129   : > { %1322 = vmatmul.mubr.bf16.gmra.mrb[28].mxu1 %v674_v10 }
 0x1c4   : > { %v1295_v26 = vpop.f32.mrb[0].mxu1 }
 0x1c5   : > { %v789_v14 = vadd.f32 %v1295_v26, %v1544_v13  ;;  %v780_v15 = vpop.f32.mrb[1].mxu1 }
 0x1c6   : > { %v781_v16 = vadd.f32 %v1544_v13, %v780_v15  ;;  %v1296_v17 = vpop.f32.mrb[2].mxu1 }
 0x1c7   : > { %v792_v18 = vadd.f32 %v1296_v17, %v1544_v13  ;;  %v783_v19 = vpop.f32.mrb[3].mxu1  ;;  %v909_v21 = vmax.f32 %v789_v14, 0.0 }
 0x1c8   : > { %v784_v20 = vadd.f32 %v1544_v13, %v783_v19  ;;  %v907_v23 = vmax.f32 %v781_v16, 0.0 }
 0x1c9   : > { %v910_v22 = vmax.f32 %v792_v18, 0.0 }
 0x1ca   : > { %v908_v24 = vmax.f32 %v784_v20, 0.0 }
 0x1cb   : > { %v1550_v25 = vpack.c.bf16 %v910_v22, %v909_v21 }
 0x1cc   : > { %v1552_v27 = vpack.c.bf16 %v908_v24, %v907_v23  ;;  %v1299_v28 = vpop.f32.mrb[4].mxu1 }
 0x1cd   : > { %v805_v29 = vadd.f32 %v1299_v28, %v1544_v13  ;;  %v796_v30 = vpop.f32.mrb[5].mxu1 }
 0x1ce   : > { %v797_v31 = vadd.f32 %v1544_v13, %v796_v30  ;;  %v1300_v32 = vpop.f32.mrb[6].mxu1 }
 0x1cf   : > { %v808_v33 = vadd.f32 %v1300_v32, %v1544_v13  ;;  %v799_v34 = vpop.f32.mrb[7].mxu1  ;;  %v913_v36 = vmax.f32 %v805_v29, 0.0  ;;  %v961_v29 = vsel %vm956_vm1, %v1552_v27, 0  ;;  %v964_v27 = vsel %vm956_vm1, %v1550_v25, 0 }
 0x1d0   : > { %v800_v35 = vadd.f32 %v1544_v13, %v799_v34  ;;  %v911_v38 = vmax.f32 %v797_v31, 0.0 }
 0x1d1   : > { %v914_v37 = vmax.f32 %v808_v33, 0.0 }
 0x1d2   : > { %v912_v39 = vmax.f32 %v800_v35, 0.0 }
 0x1d3   : > { %v1558_v40 = vpack.c.bf16 %v914_v37, %v913_v36 }
 0x1d4   : > { %v1560_v41 = vpack.c.bf16 %v912_v39, %v911_v38  ;;  %v1303_v42 = vpop.f32.mrb[8].mxu1 }
 0x1d5   : > { %v821_v43 = vadd.f32 %v1303_v42, %v1544_v13  ;;  %v812_v44 = vpop.f32.mrb[9].mxu1 }
 0x1d6   : > { %v813_v45 = vadd.f32 %v1544_v13, %v812_v44  ;;  %v1304_v46 = vpop.f32.mrb[10].mxu1 }
 0x1d7   : > { %v824_v47 = vadd.f32 %v1304_v46, %v1544_v13  ;;  %v815_v48 = vpop.f32.mrb[11].mxu1  ;;  %v917_v50 = vmax.f32 %v821_v43, 0.0 }
 0x1d8   : > { %v816_v49 = vadd.f32 %v1544_v13, %v815_v48  ;;  %v915_v52 = vmax.f32 %v813_v45, 0.0 }
 0x1d9   : > { %v918_v51 = vmax.f32 %v824_v47, 0.0 }
 0x1da   : > { %v916_v53 = vmax.f32 %v816_v49, 0.0 }
 0x1db   : > { %v1566_v54 = vpack.c.bf16 %v918_v51, %v917_v50 }
 0x1dc   : > { %v1568_v55 = vpack.c.bf16 %v916_v53, %v915_v52  ;;  %v1307_v56 = vpop.f32.mrb[12].mxu1 }
 0x1dd   : > { %v837_v57 = vadd.f32 %v1307_v56, %v1544_v13  ;;  %v828_v58 = vpop.f32.mrb[13].mxu1 }
 0x1de   : > { %v829_v59 = vadd.f32 %v1544_v13, %v828_v58  ;;  %v1308_v60 = vpop.f32.mrb[14].mxu1 }
 0x1df   : > { %v840_v61 = vadd.f32 %v1308_v60, %v1544_v13  ;;  %v831_v62 = vpop.f32.mrb[15].mxu1  ;;  %v921_v0 = vmax.f32 %v837_v57, 0.0 }
 0x1e0   : > { %v832_v63 = vadd.f32 %v1544_v13, %v831_v62  ;;  %v919_v2 = vmax.f32 %v829_v59, 0.0  ;;  %v967_v59 = vsel %vm956_vm1, %v1560_v41, 0  ;;  %v970_v41 = vsel %vm956_vm1, %v1558_v40, 0 }
 0x1e1   : > { %v922_v1 = vmax.f32 %v840_v61, 0.0 }
 0x1e2   : > { %v920_v3 = vmax.f32 %v832_v63, 0.0 }
 0x1e3   : > { %v1574_v4 = vpack.c.bf16 %v922_v1, %v921_v0 }
 0x1e4   : > { %v1576_v5 = vpack.c.bf16 %v920_v3, %v919_v2  ;;  %v1311_v6 = vpop.f32.mrb[16].mxu1 }
 0x1e5   : > { %v853_v7 = vadd.f32 %v1311_v6, %v1544_v13  ;;  %v844_v8 = vpop.f32.mrb[17].mxu1  ;;  %v982_v40 = vsel %vm956_vm1, %v1574_v4, 0 }
 0x1e6   : > { %v845_v9 = vadd.f32 %v1544_v13, %v844_v8  ;;  %v1312_v10 = vpop.f32.mrb[18].mxu1 }
 0x1e7   : > { %v856_v11 = vadd.f32 %v1312_v10, %v1544_v13  ;;  %v847_v26 = vpop.f32.mrb[19].mxu1  ;;  %v925_v15 = vmax.f32 %v853_v7, 0.0  ;;  %v979_v10 = vsel %vm956_vm1, %v1576_v5, 0 }
 0x1e8   : > { %v848_v14 = vadd.f32 %v1544_v13, %v847_v26  ;;  %v923_v17 = vmax.f32 %v845_v9, 0.0  ;;  %v973_v9 = vsel %vm956_vm1, %v1568_v55, 0  ;;  %v1376_v55 = vmov 1966171168  }
 0x1e9   : > { %v926_v16 = vmax.f32 %v856_v11, 0.0  ;;  %v1057_v11 = vunpack.c.l.s4 %v1376_v55  ;;  %v1050_v26 = vstv %s1049_s13 }
 0x1ea   : > { %v924_v18 = vmax.f32 %v848_v14, 0.0 }
 0x1eb   : > { %v949_v19 = vpack.c.bf16 %v926_v16, %v925_v15  ;;  %v1058_v14 = vunpack.c.0.s8 %v1057_v11 }
 0x1ec   : > { %v948_v20 = vpack.c.bf16 %v924_v18, %v923_v17  ;;  %v1315_v21 = vpop.f32.mrb[20].mxu1 }
 0x1ed   : > { %v869_v22 = vadd.f32 %v1315_v21, %v1544_v13  ;;  %v860_v23 = vpop.f32.mrb[21].mxu1 }
 0x1ee   : > { %v861_v24 = vadd.f32 %v1544_v13, %v860_v23  ;;  %1325 = vmatprep.subr.msk.bf16.mxu0 %vm956_vm1, %v948_v20  ;;  %v1316_v28 = vpop.f32.mrb[22].mxu1 }
 0x1ef   : > { %v929_v30 = vmax.f32 %v869_v22, 0.0  ;;  %v872_v31 = vadd.f32 %v1316_v28, %v1544_v13  ;;  %1224 = vmatpush3.bf16.xpose.msra.mxu0 %v961_v29  ;;  %v863_v32 = vpop.f32.mrb[23].mxu1 }
 0x1f0   : > { %v927_v33 = vmax.f32 %v861_v24, 0.0  ;;  %v864_v34 = vadd.f32 %v1544_v13, %v863_v32  ;;  %1326 = vmatprep.subr.msk.bf16.mxu0 %vm956_vm1, %v949_v19 }
 0x1f1   : > { %v930_v35 = vmax.f32 %v872_v31, 0.0 }
 0x1f2   : > { %v928_v36 = vmax.f32 %v864_v34, 0.0 }
 0x1f3   : > { %v951_v37 = vpack.c.bf16 %v930_v35, %v929_v30 }
 0x1f4   : > { %v950_v38 = vpack.c.bf16 %v928_v36, %v927_v33  ;;  %v1319_v39 = vpop.f32.mrb[24].mxu1 }
 0x1f5   : > { %v885_v42 = vadd.f32 %v1319_v39, %v1544_v13  ;;  %v876_v43 = vpop.f32.mrb[25].mxu1 }
 0x1f6   : > { %v877_v44 = vadd.f32 %v1544_v13, %v876_v43  ;;  %v1320_v45 = vpop.f32.mrb[26].mxu1 }
 0x1f7   : > { %1226 = vmatpush3.bf16.xpose.msra.mxu0 %v964_v27  ;;  %v933_v46 = vmax.f32 %v885_v42, 0.0  ;;  %v888_v47 = vadd.f32 %v1320_v45, %v1544_v13  ;;  %v879_v48 = vpop.f32.mrb[27].mxu1 }
 0x1f8   : > { %1327 = vmatprep.subr.msk.bf16.mxu0 %vm956_vm1, %v950_v38  ;;  %v931_v49 = vmax.f32 %v877_v44, 0.0  ;;  %v880_v50 = vadd.f32 %v1544_v13, %v879_v48 }
 0x1f9   : > { %v934_v51 = vmax.f32 %v888_v47, 0.0 }
 0x1fa   : > { %v932_v52 = vmax.f32 %v880_v50, 0.0 }
 0x1fb   : > { %v953_v53 = vpack.c.bf16 %v934_v51, %v933_v46 }
 0x1fc   : > { %v952_v56 = vpack.c.bf16 %v932_v52, %v931_v49  ;;  %v1323_v57 = vpop.f32.mrb[28].mxu1 }
 0x1fd   : > { %v901_v25 = vadd.f32 %v1323_v57, %v1544_v13  ;;  %v892_v58 = vpop.f32.mrb[29].mxu1 }
 0x1fe   : > { %v893_v60 = vadd.f32 %v1544_v13, %v892_v58  ;;  %v1324_v61 = vpop.f32.mrb[30].mxu1 }
 0x1ff   : > { %1228 = vmatpush3.bf16.xpose.msra.mxu0 %v967_v59  ;;  %v937_v62 = vmax.f32 %v901_v25, 0.0  ;;  %v904_v63 = vadd.f32 %v1324_v61, %v1544_v13  ;;  %v895_v0 = vpop.f32.mrb[31].mxu1 }
 0x200   : > { %1328 = vmatprep.subr.msk.bf16.mxu0 %vm956_vm1, %v951_v37  ;;  %v935_v1 = vmax.f32 %v893_v60, 0.0  ;;  %v896_v2 = vadd.f32 %v1544_v13, %v895_v0  ;;  %v976_v13 = vsel %vm956_vm1, %v1566_v54, 0  ;;  %v1059_v54 = vlaneseq }
 0x201   : > { %v938_v3 = vmax.f32 %v904_v63, 0.0 }
 0x202   : > { %v936_v6 = vmax.f32 %v896_v2, 0.0  ;;  %v1060_v15 = vshrl.u32 %v1059_v54, 7  ;;  %vm1073_vm2 = vcmp.lt.s32.totalorder %v1059_v54, 256 }
 0x203   : > { %v955_v7 = vpack.c.bf16 %v938_v3, %v937_v62 }
 0x204   : > { %v954_v8 = vpack.c.bf16 %v936_v6, %v935_v1  ;;  %v1061_v19 = vsub.s32 %v1058_v14, %v1060_v15 }
 0x207   : > { %1230 = vmatpush3.bf16.xpose.msra.mxu0 %v970_v41 }
 0x208   : > { %1329 = vmatprep.subr.msk.bf16.mxu0 %vm956_vm1, %v952_v56 }
 0x20f   : > { %1232 = vmatpush3.bf16.xpose.msra.mxu0 %v973_v9 }
 0x210   : > { %1330 = vmatprep.subr.msk.bf16.mxu0 %vm956_vm1, %v953_v53 }
 0x217   : > { %1234 = vmatpush3.bf16.xpose.msra.mxu0 %v976_v13 }
 0x218   : > { %1331 = vmatprep.subr.msk.bf16.mxu0 %vm956_vm1, %v954_v8 }
 0x21f   : > { %1236 = vmatpush3.bf16.xpose.msra.mxu0 %v979_v10 }
 0x220   : > { %1332 = vmatprep.subr.msk.bf16.mxu0 %vm956_vm1, %v955_v7 }
 0x227   : > { %1238 = vmatpush3.bf16.xpose.msra.mxu0 %v982_v40 }
 0x22e   : > { %1240 = vmatmul.mubr.msk.bf16.vlgmr.msra.gmra.mrb[32].mxu0 %vm956_vm1, %v1537_v12 }
 0x301   : > { %v1042_v5 = vpop.f32.mrb[32].mxu0 }
 0x302   : > { %v1051_v16 = vadd.f32 %v1050_v26, %v1042_v5  ;;  %v1044_v17 = vpop.f32.mrb[33].mxu0 }
 0x303   : > { %v1052_v18 = vadd.f32 %v1050_v26, %v1044_v17  ;;  %v1046_v4 = vpop.f32.mrb[34].mxu0 }
 0x304   : > { %v1047_v20 = vpop.f32.mrb[35].mxu0 }
 0x305   : > { %v1055_v21 = vcombine.low %v1051_v16, %v1052_v18 }
 0x307   : > { %v1062_v12 = vrot.slane %v1055_v21, %v1061_v19 }
 0x309   : > { %v1069_v22 = vrot.slane %v1062_v12, %v1061_v19 }
 0x30b   : > { %1075 = vst.msk [vmem:[%s279_s17] sm:$0x3] %vm1073_vm2, %v1069_v22 }
 0x30c PF: > { %s18_s26 = sadd.s32 1, %s1374_s26  }
 0x30d   : > { %p15_p5 = scmp.ge.s32.totalorder %s18_s26, 6  }
 0x30f   :  { %17 = sbr.rel (!%p15_p5) target bundleno = 2 (0x2), region = 78 }

</bundles_post_ra>
